<compile_context>
chip_gen: v7x
topology: tpu7x:2x2x1
jax: 0.10.0
libtpu: 0.0.40
codegen_flags: <defaults>
</compile_context>

<pallas_src>
import numpy as np
import jax
import jax.numpy as jnp
from jax import lax
from jax.experimental import pallas as pl
from jax.experimental.pallas import tpu as pltpu

# ----- Cityscapes label-mapping constants (from the reference module) -----
VALID_CLASSES = [7, 8, 11, 12, 13, 17, 19, 20, 21, 22, 23, 24, 25, 26, 27, 28,
                 31, 32, 33]
CLASS_MAP = dict(zip(VALID_CLASSES, range(19)))
VOID_CLASSES = [0, 1, 2, 3, 4, 5, 6, 9, 10, 14, 15, 16, 18, 29, 30, -1]
IGNORE_INDEX = 250

MAX_INSTANCES = 16  # static padding of the instance list


def _row_tile(h):
    # Largest row tile <= 256 (multiple of 32 -> valid for u8/i8 and f32/i32
    # sublane packing), or the full height when it is already small.
    return h if h <= 256 else 256


# ------------------------- image normalization kernel -------------------------
def _img_norm_kernel(x_ref, o_ref):
    # fused uint8 -> float32 cast + scale (single VALU multiply, no divide)
    o_ref[...] = x_ref[...].astype(jnp.float32) * jnp.float32(1.0 / 255.0)


def normalize_image(img_chw_u8):
    C, H, W = img_chw_u8.shape
    th = _row_tile(H)
    return pl.pallas_call(
        _img_norm_kernel,
        out_shape=jax.ShapeDtypeStruct((C, H, W), jnp.float32),
        grid=(C, pl.cdiv(H, th)),
        # BGR reversal done by the index_map: out channel c <- in channel C-1-c
        in_specs=[pl.BlockSpec((1, th, W), lambda c, h: (C - 1 - c, h, 0))],
        out_specs=pl.BlockSpec((1, th, W), lambda c, h: (c, h, 0)),
        compiler_params=pltpu.CompilerParams(
            dimension_semantics=("parallel", "parallel")),
    )(img_chw_u8)


# ------------------------- encode_segmap kernel -------------------------
def _encode_segmap_kernel(sem_ref, out_ref):
    v = sem_ref[...]              # int32 (th, W) tile of original labelIds
    # Default everything (void classes + anything else) to ignore_index, then
    # map the 19 valid classes.  Identical to the sequential reference for the
    # real Cityscapes labelId domain (-1..33).
    out = jnp.full_like(v, IGNORE_INDEX)
    for c, idx in CLASS_MAP.items():
        out = jnp.where(v == c, idx, out)
    out_ref[...] = out


def encode_segmap(sem_i32):
    H, W = sem_i32.shape
    th = _row_tile(H)
    return pl.pallas_call(
        _encode_segmap_kernel,
        out_shape=jax.ShapeDtypeStruct((H, W), jnp.int32),
        grid=(pl.cdiv(H, th),),
        in_specs=[pl.BlockSpec((th, W), lambda i: (i, 0))],
        out_specs=pl.BlockSpec((th, W), lambda i: (i, 0)),
        compiler_params=pltpu.CompilerParams(dimension_semantics=("parallel",)),
    )(sem_i32)


# ------------------------- processBinayMasks kernel -------------------------
def _instances_kernel(ids_ref, inst_ref, boxes_ref, labels_ref, valid_ref,
                      masks_ref):
    # ids_ref:   SMEM (K,)    int32, sorted candidate instance ids (prefetched)
    # inst_ref:  VMEM (H,W)   int32 instance label map (resident across grid)
    # boxes_ref: SMEM (K,4)   f32   [min_col, min_row, max_col, max_row]
    # labels_ref:SMEM (K,)    int32 encoded label - 11
    # valid_ref: SMEM (K,)    int32 1 iff this slot is a real instance
    # masks_ref: VMEM (1,H,W) int8  binary mask block for instance k
    k = pl.program_id(0)
    H, W = inst_ref.shape
    inst_id = ids_ref[k]
    mask = inst_ref[...] == inst_id

    # label = int(instId / 1000); encode_instance_label (scalar select chain)
    cls = inst_id // 1000
    enc = jnp.int32(-1)
    for c, idx in CLASS_MAP.items():
        enc = jnp.where(cls == c, jnp.int32(idx), enc)
    is_valid = jnp.logical_and(inst_id >= 1000, enc >= 0)
    v_i = is_valid.astype(jnp.int32)

    # mask_to_tight_box via 1-D projections (2 full reductions + 4 tiny ones)
    row_any = jnp.any(mask, axis=1, keepdims=True)          # (H,1)
    col_any = jnp.any(mask, axis=0, keepdims=True)          # (1,W)
    row_iota = lax.broadcasted_iota(jnp.int32, (H, 1), 0)
    col_iota = lax.broadcasted_iota(jnp.int32, (1, W), 1)
    min_row = jnp.min(jnp.where(row_any, row_iota, H))
    max_row = jnp.max(jnp.where(row_any, row_iota, -1))
    min_col = jnp.min(jnp.where(col_any, col_iota, W))
    max_col = jnp.max(jnp.where(col_any, col_iota, -1))
    max_row = jnp.where(min_row == max_row, max_row + 1, max_row)
    max_col = jnp.where(min_col == max_col, max_col + 1, max_col)

    boxes_ref[k, 0] = (min_col * v_i).astype(jnp.float32)
    boxes_ref[k, 1] = (min_row * v_i).astype(jnp.float32)
    boxes_ref[k, 2] = (max_col * v_i).astype(jnp.float32)
    boxes_ref[k, 3] = (max_row * v_i).astype(jnp.float32)
    labels_ref[k] = jnp.where(is_valid, enc - 11, jnp.int32(-12))
    valid_ref[k] = v_i
    masks_ref[...] = jnp.logical_and(mask, is_valid).astype(jnp.int8).reshape(
        1, H, W)


def process_binary_masks(inst_i32, max_instances=MAX_INSTANCES):
    H, W = inst_i32.shape
    # TODO(synk): jnp.unique is an XLA sort over H*W int32 and silently drops
    #             ids beyond max_instances; at full Cityscapes resolution a
    #             histogram-style candidate extraction would be cheaper.
    ids = jnp.unique(inst_i32, size=max_instances, fill_value=0).astype(jnp.int32)

    grid_spec = pltpu.PrefetchScalarGridSpec(
        num_scalar_prefetch=1,
        grid=(max_instances,),
        # instance map resident in VMEM across the whole grid (constant index)
        in_specs=[pl.BlockSpec((H, W), lambda k, ids: (0, 0))],
        out_specs=(
            pl.BlockSpec(memory_space=pltpu.MemorySpace.SMEM),   # boxes
            pl.BlockSpec(memory_space=pltpu.MemorySpace.SMEM),   # labels
            pl.BlockSpec(memory_space=pltpu.MemorySpace.SMEM),   # valid
            pl.BlockSpec((1, H, W), lambda k, ids: (k, 0, 0)),   # masks (i8)
        ),
    )
    boxes, labels, valid, masks = pl.pallas_call(
        _instances_kernel,
        grid_spec=grid_spec,
        out_shape=(
            jax.ShapeDtypeStruct((max_instances, 4), jnp.float32),
            jax.ShapeDtypeStruct((max_instances,), jnp.int32),
            jax.ShapeDtypeStruct((max_instances,), jnp.int32),
            jax.ShapeDtypeStruct((max_instances, H, W), jnp.int8),
        ),
        compiler_params=pltpu.CompilerParams(
            # "arbitrary": the small SMEM outputs are resident across the grid,
            # so the K axis must not be sharded across TensorCores.
            dimension_semantics=("arbitrary",),
            vmem_limit_bytes=48 * 1024 * 1024),
    )(ids, inst_i32)
    return boxes, masks, labels, valid


# ------------------------- forward wrapper -------------------------
def cityscapes_transforms_forward(img_hwc_u8, sem_u8, inst_i32, norm=True):
    """Mirrors cityscapesTransforms.forward (augmentation=False)."""
    # glue: HWC -> CHW transpose stays uint8; cast/scale/BGR flip are in Pallas
    img_chw_u8 = jnp.transpose(img_hwc_u8, (2, 0, 1))
    if norm:
        img = normalize_image(img_chw_u8)       # BGR flip + cast + /255
    else:
        img = img_chw_u8[::-1].astype(jnp.float32)   # BGR flip only (glue)

    sem_enc = encode_segmap(sem_u8.astype(jnp.int32))
    boxes, masks, labels, valid = process_binary_masks(inst_i32.astype(jnp.int32))
    return img, [sem_enc, boxes, masks, labels, valid]


# ------------------------- numpy reference (for validation) -------------------------
def _numpy_reference(img_np, sem_np, inst_np):
    img = img_np.astype(np.float64)[:, :, ::-1].transpose(2, 0, 1) / 255.0
    sem = sem_np.astype(np.int64).copy()
    for vc in VOID_CLASSES:
        sem[sem == vc] = IGNORE_INDEX
    for c, idx in CLASS_MAP.items():
        sem[sem == c] = idx
    boxes, masks, labels = [], [], []
    for inst_id in np.sort(np.unique(inst_np)):
        if inst_id < 1000:
            continue
        cls = int(inst_id) // 1000
        if cls not in CLASS_MAP:
            continue
        mask = inst_np == inst_id
        rows, cols = np.nonzero(mask)
        bbox = [cols.min(), rows.min(), cols.max(), rows.max()]
        if bbox[1] == bbox[3]:
            bbox[3] += 1
        if bbox[0] == bbox[2]:
            bbox[2] += 1
        boxes.append(bbox)
        masks.append(mask)
        labels.append(CLASS_MAP[cls] - 11)
    return (img.astype(np.float32), sem,
            np.array(boxes, np.float32), np.array(masks, bool),
            np.array(labels, np.int64))


if __name__ == "__main__":
    H, W, C = 16, 16, 3
    key = jax.random.PRNGKey(0)
    k1, k2, k3 = jax.random.split(key, 3)

    img = jax.random.randint(k1, (H, W, C), 0, 256).astype(jnp.uint8)
    sem = jax.random.randint(k2, (H, W), 0, 34).astype(jnp.uint8)
    inst_choices = jnp.array([0, 500, 7001, 7002, 26001, 26002, 24003, 5001],
                             dtype=jnp.int32)
    inst = inst_choices[jax.random.randint(k3, (H, W), 0, inst_choices.shape[0])]

    img_out, (sem_out, boxes, masks, labels, valid) = \
        cityscapes_transforms_forward(img, sem, inst)
    jax.block_until_ready((img_out, sem_out, boxes, masks, labels, valid))

    # host-side filtering of padded instance slots (mirrors torch.stack lists)
    v = np.asarray(valid).astype(bool)
    boxes_f = np.asarray(boxes)[v]
    masks_f = np.asarray(masks)[v].astype(bool)
    labels_f = np.asarray(labels)[v]

    # validate against a pure-numpy reference of the forward pass
    r_img, r_sem, r_boxes, r_masks, r_labels = _numpy_reference(
        np.asarray(img), np.asarray(sem), np.asarray(inst))
    np.testing.assert_allclose(np.asarray(img_out), r_img, atol=1e-6)
    np.testing.assert_array_equal(np.asarray(sem_out), r_sem)
    np.testing.assert_allclose(boxes_f, r_boxes, atol=0)
    np.testing.assert_array_equal(masks_f, r_masks)
    np.testing.assert_array_equal(labels_f.astype(np.int64), r_labels)

    print("KERNEL_OK")
</pallas_src>

<mosaic_0001>
module attributes {stable_mosaic.version = 11 : i64} {
  func.func @_img_norm_kernel(%arg0: i32, %arg1: i32, %arg2: memref<1x16x16xi8, #tpu.memory_space<vmem>>, %arg3: memref<1x16x16xf32, #tpu.memory_space<vmem>>) attributes {dimension_semantics = [#tpu.dimension_semantics<parallel>, #tpu.dimension_semantics<parallel>], iteration_bounds = array<i64: 3, 1>, scalar_prefetch = 0 : i64, scratch_operands = 0 : i64, tpu.core_type = #tpu.core_type<tc>, window_params = [{transform_indices = @transform_0, window_bounds = array<i64: 1, 16, 16>}, {transform_indices = @transform_1, window_bounds = array<i64: 1, 16, 16>}]} {
    %c0 = arith.constant 0 : index
    %c0_0 = arith.constant 0 : index
    %c0_1 = arith.constant 0 : index
    %0 = vector.load %arg2[%c0, %c0_0, %c0_1] : memref<1x16x16xi8, #tpu.memory_space<vmem>>, vector<1x16x16xi8>
    %1 = arith.uitofp %0 : vector<1x16x16xi8> to vector<1x16x16xf32>
    %cst = arith.constant 0.00392156886 : f32
    %2 = vector.broadcast %cst : f32 to vector<1x16x16xf32>
    %3 = arith.mulf %1, %2 : vector<1x16x16xf32>
    %c0_2 = arith.constant 0 : index
    %c0_3 = arith.constant 0 : index
    %c0_4 = arith.constant 0 : index
    %4 = vector.load %arg3[%c0_2, %c0_3, %c0_4] : memref<1x16x16xf32, #tpu.memory_space<vmem>>, vector<1x16x16xf32>
    tpu.vector_store %arg3[%c0_2, %c0_3, %c0_4], %3 {strides = array<i32>} : memref<1x16x16xf32, #tpu.memory_space<vmem>>, vector<1x16x16xf32>,
    return
  }
  func.func @transform_0(%arg0: i32, %arg1: i32) -> (i32, i32, i32) {
    %c2_i32 = arith.constant 2 : i32
    %0 = arith.subi %c2_i32, %arg0 : i32
    %c0_i32 = arith.constant 0 : i32
    %c0_i32_0 = arith.constant 0 : i32
    return %0, %arg1, %c0_i32 : i32, i32, i32
  }
  func.func @transform_1(%arg0: i32, %arg1: i32) -> (i32, i32, i32) {
    %c0_i32 = arith.constant 0 : i32
    %c0_i32_0 = arith.constant 0 : i32
    return %arg0, %arg1, %c0_i32 : i32, i32, i32
  }
}

</mosaic_0001>

<bundles_post_ra>
// kernel: tpu_custom_call.1
= control target key start
LH: loop header
LB: loop body
LE: loop exit
PB: predicated region body
PF: predicated region fallthrough
CT: control target
= control target key end

     0   :  { %6 = vsyncpa [#allocation3], 0  ;;  %s738_s0 = inlined_call_operand.hbm [shape: u8[3,16,16], index: 0, kind: input, shape index: {}]   ;;  %s739_s1 = inlined_call_operand.hbm [shape: f32[3,16,16], index: 1, kind: output, shape index: {}]  }
   0x1   :  { %8 = vsyncpa [#allocation3 + $0x1], 0 }
   0x2   :  { %9 = vsyncpa [#allocation4], 0 }
   0x3   :  { %11 = vsyncpa [#allocation4 + $0x1], 0  ;;  %s540_s6 = smov 0   ;;  %s542_s7 = smov 0  }
   0x4   :  { %s544_s8 = smov 0   ;;  %s546_s9 = smov 0  }
   0x5   :  { %s548_s10 = smov 0   ;;  %s550_s11 = smov 0  }
   0x6   :  { %s552_s12 = smov 0   ;;  %s554_s13 = smov 0  }
   0x7   :  { %s556_s14 = smov 0  }
   0x8 LB: > { %s275_s15 = sadd.s32 4294967295, %s522_s14   ;;  %s276_s16 = sadd.s32 4294967294, %s522_s14   ;;  %s522_s14 = sphi %s556_s14, %s17_s14   ;;  %s518_s13 = sphi %s554_s13, %s755_s13   ;;  %s514_s12 = sphi %s552_s12, %s754_s12   ;;  %s510_s11 = sphi %s550_s11, %s753_s11   ;;  %s506_s10 = sphi %s548_s10, %s752_s10   ;;  %s502_s9 = sphi %s546_s9, %s751_s9   ;;  %s498_s8 = sphi %s544_s8, %s750_s8   ;;  %s494_s7 = sphi %s542_s7, %s749_s7   ;;  %s490_s6 = sphi %s540_s6, %s748_s6  }
   0x9   : > { %s29_s17 = sadd.s32 1, %s518_s13  ;;  %s33_s18 = ssub.s32 2, %s518_s13 }
   0xa   : > { %p31_p0 = scmp.ge.s32.totalorder %s29_s17, 3  ;;  %s40_s19 = sadd.s32 1, %s510_s11 }
   0xb   : > { %p47_p1 = scmp.ne.s32.totalorder %s510_s11, %s506_s10  ;;  %p48_p2 = scmp.eq.s32.totalorder %s522_s14, 0 }
   0xc   : > { %s757_s17 = smov (%p31_p0, %s29_s17), 0  ;;  %p53_p4 = scmp.ne.s32.totalorder %s506_s10, %s502_s9 }
   0xd   : > { %p593_p3 = por %p48_p2, %p47_p1  ;;  %s34_s21 = ssub.s32 2, %s757_s17 }
   0xe   : > { %p54_p5 = scmp.eq.s32.totalorder %s275_s15, 0  ;;  %s35_s22 = ssub.s32 %s33_s18, %s34_s21 }
   0xf   : > { %s63_s23 = ssub.s32 %s518_s13, %s757_s17  ;;  %p38_p6 = scmp.eq.s32.totalorder %s35_s22, 0 }
  0x10   : > { %p601_p7 = por %p54_p5, %p53_p4  ;;  %p66_p8 = scmp.eq.s32.totalorder %s63_s23, 0 }
  0x11   : > { %s68_s25 = sadd.s32 1, %s498_s8  ;;  %p78_p9 = scmp.ne.s32.totalorder %s498_s8, %s494_s7 }
  0x12   : > { %s607_s26 = scalar_select %p38_p6, %s510_s11, %s40_s19  }
  0x13   : > { %s610_s27 = scalar_select %p66_p8, %s498_s8, %s68_s25  }
  0x14   : > { %p79_p10 = scmp.eq.s32.totalorder %s275_s15, 2  ;;  %p84_p11 = scmp.ne.s32.totalorder %s494_s7, %s490_s6 }
  0x15   : > { %p85_p12 = scmp.eq.s32.totalorder %s276_s16, 2  ;;  %p308_p1 = scmp.lt.s32.totalorder %s522_s14, 3 }
  0x16   : > { %p616_p13 = por %p79_p10, %p78_p9  ;;  %s105_s30 = sand.u32 1, %s510_s11  }
  0x17   : > { %p620_p0 = por %p85_p12, %p84_p11  ;;  %s290_s2 = sshll.u32 %s33_s18, 6 }
  0x18   : > { %s743_s28 = scalar_select %p616_p13, 1, 0 }
  0x19   : > { %s744_s29 = scalar_select %p620_p0, 1, 0 }
  0x1a   : > { %s279_s3 = sshll.u32 %s105_s30, 2  ;;  %s629_s9 = scalar_lea.hbm %s738_s0, %s290_s2 }
  0x1b   : > { %s109_s15 = scalar_lea.vmem [#allocation2], %s279_s3  ;;  %p633_p2 = pnand %p308_p1, %p593_p3 }
  0x1c   : > { %s119_s16 = sshll.u32 %s109_s15, 4  ;;  %s639_s18 = scalar_lea.sflag [#allocation3], %s105_s30  ;;  %s637_s16 = int_to_ptr.vmem [resolvable:$true] %s119_s16 }
  0x1d   : > { %s386_s21 = scalar_lea.hbm %s629_s9, 64  ;;  %p388_p5 = pneg %p633_p2 }
  0x1e   : > { %p387_p4 = scmp.ne.s32.totalorder %s629_s9, %s386_s21  ;;  %s391_s23 = scalar_lea.hbm %s738_s0, 192 }
  0x1f   : > { %p392_p3 = scmp.lt.u32.totalorder %s629_s9, %s738_s0  ;;  %p393_p9 = scmp.lt.u32.totalorder %s391_s23, %s386_s21 }
  0x20   : > { %p389_p6 = pnand %p388_p5, %p387_p4  ;;  %p395_p11 = scmp.lt.u32.totalorder %s386_s21, %s629_s9 }
  0x21   : > { %p394_p10 = por %p393_p9, %p392_p3 }
  0x22   : > { %p390_p8 = pneg %p389_p6 }
  0x23   : > { %p396_p12 = por %p395_p11, %p394_p10 }
  0x25   : > { %p397_p1 = pnand %p396_p12, %p390_p8 }
  0x27   : > { %400 = shalt.err (!%p397_p1)
}
  0x28   : > { %s401_s30 = scalar_lea.vmem %s637_s16, 64  ;;  %s524_s3 = smov [#allocation2]  }
  0x29   : > { %p402_p4 = scmp.ne.s32.totalorder %s637_s16, %s401_s30  ;;  %s406_s4 = sshll.u32 %s524_s3, 4  ;;  %s407_s4 = int_to_ptr.vmem [resolvable:$false] %s406_s4 }
  0x2a   : > { %s408_s5 = scalar_lea.vmem %s407_s4, 128  ;;  %p409_p13 = scmp.lt.s32.totalorder %s637_s16, %s407_s4 }
  0x2b   : > { %p404_p6 = pnand %p402_p4, %p388_p5  ;;  %p410_p3 = scmp.lt.s32.totalorder %s408_s5, %s401_s30 }
  0x2d   : > { %p405_p0 = pneg %p404_p6  ;;  %p411_p9 = por %p410_p3, %p409_p13 }
  0x2f   : > { %p412_p10 = pnand %p411_p9, %p405_p0 }
  0x31   : > { %415 = shalt.err (!%p412_p10)
}
  0x32   : > { %s525_s15 = smov 32   ;;  %s526_s21 = smov 2  }
  0x33   : > { %303 = dma.hbm_to_vmem [thread:$0]  (!%p633_p2), %s629_s9, 64, %s637_s16, %s639_s18, %s525_s15, %s525_s15, %s526_s21  }
  0x34   : > { %p282_p5 = scmp.ge.s32.totalorder %s522_s14, 1  ;;  %p127_p8 = scmp.lt.s32.totalorder %s522_s14, 4 }
  0x36   : > { %p128_p11 = pnand %p282_p5, %p127_p8 }
  0x37   : > { %s133_s22 = sand.u32 (!%p128_p11), 1, %s506_s10  }
  0x38   : > { %131 = sbr.rel (%p128_p11) target bundleno = 91 (0x5b), region = 24  ;;  %s283_s20 = sshll.u32 (!%p128_p11), %s133_s22, 2 }
  0x39   : > { %s134_s23 = scalar_lea.sflag (!%p128_p11), [#allocation3], %s133_s22  ;;  %s137_s25 = scalar_lea.vmem (!%p128_p11), [#allocation2], %s283_s20 }
  0x3f   : > { %481 = dma.done.wait (%p601_p7), %s134_s23, 64  }
  0x40   : > { %483 = vsyncadd (%p601_p7), %s134_s23, 4294967232  ;;  %s153_s2 = sand.u32 1, %s494_s7   ;;  %v293_v0 = vld [vmem:[%s137_s25] sm:$0xf]   ;;  %s291_s9 = sshll.u32 %s514_s12, 8  ;;  %vm169_vm0 = vcmask 130048  }
  0x41   : > { %s284_s19 = sshll.u32 %s153_s2, 4  ;;  %v294_v1 = vunpack.c.0.s8 %v293_v0  ;;  %v295_v2 = vunpack.c.1.s8 %v293_v0  ;;  %s679_s24 = scalar_lea.hbm %s739_s1, %s291_s9 }
  0x42   : > { %s155_s16 = scalar_lea.vmem [#allocation5], %s284_s19  ;;  %s683_s12 = scalar_lea.sflag [#allocation4], %s153_s2 }
  0x43   : > { %v163_v3 = vand.u32 255, %v294_v1  ;;  %v164_v4 = vand.u32 255, %v295_v2  ;;  %s188_s18 = sshll.u32 %s155_s16, 4  ;;  %p746_p13 = scmp.ne.s32.totalorder %s743_s28, 0  ;;  %s681_s18 = int_to_ptr.vmem [resolvable:$true] %s188_s18 }
  0x44   : > { %s416_s4 = scalar_lea.vmem %s681_s18, 256  ;;  %s527_s5 = smov [#allocation5]  }
  0x45   : > { %v165_v5 = vcvt.s32.f32 %v163_v3  ;;  %v166_v6 = vcvt.s32.f32 %v164_v4  ;;  %p417_p7 = scmp.ne.s32.totalorder %s681_s18, %s416_s4  ;;  %s420_s15 = sshll.u32 %s527_s5, 4  ;;  %s421_s15 = int_to_ptr.vmem [resolvable:$false] %s420_s15 }
  0x46   : > { %s422_s21 = scalar_lea.vmem %s421_s15, 512  ;;  %p423_p12 = scmp.lt.s32.totalorder %s681_s18, %s421_s15 }
  0x47   : > { %v167_v7 = vmul.f32 0.003921569, %v165_v5  ;;  %v168_v8 = vmul.f32 0.003921569, %v166_v6  ;;  %p418_p0 = pnand %p417_p7, %p746_p13  ;;  %p424_p1 = scmp.lt.s32.totalorder %s422_s21, %s416_s4 }
  0x49   : > { %170 = vst.msk [vmem:[%s155_s16] sm:$0xff] %vm169_vm0, %v167_v7  ;;  %171 = vst.msk [vmem:[%s155_s16 + $0x8] sm:$0xff] %vm169_vm0, %v168_v8  ;;  %p419_p2 = pneg %p418_p0  ;;  %p425_p4 = por %p424_p1, %p423_p12 }
  0x4b   : > { %p426_p6 = pnand %p425_p4, %p419_p2 }
  0x4d   : > { %429 = shalt.err (!%p426_p6)
}
  0x4e   : > { %s430_s22 = scalar_lea.hbm %s679_s24, 256  ;;  %s434_s25 = scalar_lea.hbm %s739_s1, 768 }
  0x4f   : > { %p431_p3 = scmp.ne.s32.totalorder %s679_s24, %s430_s22  ;;  %p435_p5 = scmp.lt.u32.totalorder %s679_s24, %s739_s1 }
  0x50   : > { %p436_p8 = scmp.lt.u32.totalorder %s434_s25, %s430_s22  ;;  %p438_p7 = scmp.lt.u32.totalorder %s430_s22, %s679_s24 }
  0x51   : > { %p432_p9 = pnand %p431_p3, %p746_p13 }
  0x52   : > { %p437_p11 = por %p436_p8, %p435_p5 }
  0x53   : > { %p433_p10 = pneg %p432_p9 }
  0x54   : > { %p439_p0 = por %p438_p7, %p437_p11 }
  0x56   : > { %p440_p2 = pnand %p439_p0, %p433_p10 }
  0x58   : > { %443 = shalt.err (!%p440_p2)
}
  0x59   : > { %s528_s9 = smov 128   ;;  %s529_s16 = smov 8  }
  0x5a   : > { %298 = dma.vmem_to_hbm [thread:$0]  (%p746_p13), %s681_s18, 256, %s679_s24, %s683_s12, %s528_s9, %s528_s9, %s529_s16  }
  0x5b PF: > { %p309_p12 = scmp.ge.s32.totalorder %s522_s14, 2  ;;  %s203_s30 = sand.u32 1, %s490_s6  }
  0x5c   : > { %p747_p1 = scmp.ne.s32.totalorder %s744_s29, 0  ;;  %s204_s3 = scalar_lea.sflag [#allocation4], %s203_s30 }
  0x5e   : > { %p305_p4 = pnand %p309_p12, %p747_p1 }
  0x60   : > { %485 = dma.done.wait (!%p305_p4), %s204_s3, 256  }
  0x61   : > { %487 = vsyncadd (!%p305_p4), %s204_s3, 4294967040  ;;  %s17_s14 = sadd.s32 1, %s522_s14   ;;  %s748_s6 = smov %s494_s7 }
  0x62   : > { %p14_p6 = scmp.ge.s32.totalorder %s17_s14, 5   ;;  %s749_s7 = smov %s498_s8 }
  0x63   : > { %s750_s8 = smov %s610_s27  ;;  %s751_s9 = smov %s506_s10 }
  0x64   : > { %s752_s10 = smov %s510_s11  ;;  %s753_s11 = smov %s607_s26 }
  0x65   : > { %s754_s12 = smov %s518_s13  ;;  %s755_s13 = smov %s757_s17 }
  0x66   :  { %16 = sbr.rel (!%p14_p6) target bundleno = 8 (0x8), region = 69 }
  0x6d   :  { %209 = vsyncpa [#allocation3], 1 }
  0x6e   :  { %211 = vsyncpa [#allocation3 + $0x1], 1 }
  0x6f   :  { %212 = vsyncpa [#allocation4], 1 }
  0x70   :  { %214 = vsyncpa [#allocation4 + $0x1], 1 }

</bundles_post_ra>
